<compile_context>
chip_gen: v6e
topology: v6e:2x2x1
jax: 0.10.0
libtpu: 0.0.40
codegen_flags: <defaults>
</compile_context>

<pallas_src>
import math
import functools

import jax
import jax.numpy as jnp
from jax import lax
from jax.experimental import pallas as pl
from jax.experimental.pallas import tpu as pltpu


def _pick_tile(s, target, unit):
    """Largest tile <= target that divides s and is a multiple of unit (else s)."""
    if s <= target:
        return s
    t = (min(target, s) // unit) * unit
    while t >= unit:
        if s % t == 0:
            return t
        t -= unit
    return s


def _vmem_limit_bytes():
    """Generation-aware scoped-VMEM budget (leave headroom for Mosaic scratch)."""
    try:
        cap = pltpu.get_tpu_info().vmem_capacity_bytes
    except Exception:
        return None                        # unknown chip -> compiler default
    if cap <= 64 * 1024 * 1024:            # v7x: 64 MiB per TensorCore
        return 48 * 1024 * 1024
    return 100 * 1024 * 1024               # v5e / v6e: 128 MiB physical


# ---------------------------------------------------------------------------
# Linear (projection) kernel: y = x @ W_t + b, weights pre-transposed (in,out).
# ---------------------------------------------------------------------------

def _linear_kernel(x_ref, w_ref, b_ref, o_ref):
    """x:(tm,Din), w:(Din,tn) pre-transposed, b:(1,tn) fp32 -> o:(tm,tn)."""
    o_ref[...] = (jnp.dot(x_ref[...], w_ref[...],
                          preferred_element_type=jnp.float32)
                  + b_ref[...]).astype(o_ref.dtype)


def _linear(x, w_t, b, *, out_dtype, row_tile, col_tile, vmem_limit):
    """Tiled y = x @ w_t + b with x:(M,Din), w_t:(Din,Dout), b:(1,Dout) fp32."""
    M, Din = x.shape
    Dout = w_t.shape[1]
    tm = _pick_tile(M, row_tile, 8)
    tn = _pick_tile(Dout, col_tile, 128)
    assert M % tm == 0 and Dout % tn == 0
    grid = (M // tm, Dout // tn)

    itemsize = jnp.dtype(x.dtype).itemsize
    cost = pl.CostEstimate(
        flops=int(2 * M * Din * Dout),
        transcendentals=0,
        bytes_accessed=int((M * Din + Din * Dout + M * Dout) * itemsize
                           + Dout * 4),
    )

    # Note: the weight block index is constant when Dout//tn == 1, so the
    # weight is DMA'd once for the whole grid (no per-q-tile re-fetch).
    return pl.pallas_call(
        _linear_kernel,
        out_shape=jax.ShapeDtypeStruct((M, Dout), out_dtype),
        grid_spec=pltpu.PrefetchScalarGridSpec(
            num_scalar_prefetch=0,
            grid=grid,
            in_specs=[pl.BlockSpec((tm, Din), lambda i, j: (i, 0)),
                      pl.BlockSpec((Din, tn), lambda i, j: (0, j)),
                      pl.BlockSpec((1, tn), lambda i, j: (0, j))],
            out_specs=pl.BlockSpec((tm, tn), lambda i, j: (i, j)),
        ),
        compiler_params=pltpu.CompilerParams(
            dimension_semantics=("parallel", "parallel"),
            vmem_limit_bytes=vmem_limit),
        cost_estimate=cost,
    )(x, w_t, b)


# ---------------------------------------------------------------------------
# Flash attention kernel on pre-projected (and pre-scaled) Q / K / V.
# ---------------------------------------------------------------------------

def _flash_attn_kernel(q_ref, k_ref, v_ref, o_ref,
                       acc_scr, m_scr, l_scr, *, h, d_k, approx_recip):
    """One (batch, q-tile, kv-tile) grid step.

    q_ref: (1, tq, D)    -- Q already scaled by 1/sqrt(d_k)
    k_ref, v_ref: (1, tk, D)
    o_ref: (1, tq, D)    -- written only on the last kv step
    acc_scr: (tq, D) fp32 context accumulator
    m_scr, l_scr: (h, tq, 1) fp32 running max / sum, indexed per head.
    """
    ki = pl.program_id(2)
    nk = pl.num_programs(2)

    @pl.when(ki == 0)
    def _init():
        m_scr[...] = jnp.full(m_scr.shape, -jnp.inf, dtype=m_scr.dtype)
        l_scr[...] = jnp.zeros(l_scr.shape, dtype=l_scr.dtype)
        acc_scr[...] = jnp.zeros(acc_scr.shape, dtype=acc_scr.dtype)

    q = q_ref[0]                                   # (tq, D)
    k = k_ref[0]                                   # (tk, D)
    v = v_ref[0]                                   # (tk, D)

    # Online-softmax update, one head at a time via static lane slices
    # (no (S, h, d_k) <-> (h, S, d_k) relayouts).
    # TODO(synk): pad d_k to >=128 (or add a head grid axis) to fill the
    # 256-wide MXU on v6e/v7x when heads are narrow.
    for hh in range(h):
        sl = slice(hh * d_k, (hh + 1) * d_k)
        # Scores: contract d_k of both operands (no explicit K transpose).
        s = lax.dot_general(q[:, sl], k[:, sl],
                            dimension_numbers=(((1,), (1,)), ((), ())),
                            preferred_element_type=jnp.float32)   # (tq, tk)
        m_prev = m_scr[hh]                                        # (tq, 1)
        m_new = jnp.maximum(m_prev, jnp.max(s, axis=-1, keepdims=True))
        alpha = jnp.exp(m_prev - m_new)
        p = jnp.exp(s - m_new)                                    # fp32
        l_scr[hh] = alpha * l_scr[hh] + jnp.sum(p, axis=-1, keepdims=True)
        pv = lax.dot_general(p.astype(v.dtype), v[:, sl],
                             dimension_numbers=(((1,), (0,)), ((), ())),
                             preferred_element_type=jnp.float32)  # (tq, d_k)
        acc_scr[:, sl] = alpha * acc_scr[:, sl] + pv
        m_scr[hh] = m_new

    @pl.when(ki == nk - 1)
    def _finalize():
        # Scale the accumulator per head in place (no concatenate copy), then
        # emit a single lane-dense (tq, D) store.
        for hh in range(h):
            sl = slice(hh * d_k, (hh + 1) * d_k)
            inv_l = pl.reciprocal(l_scr[hh], approx=approx_recip)  # (tq, 1)
            acc_scr[:, sl] = acc_scr[:, sl] * inv_l
        o_ref[0] = acc_scr[...].astype(o_ref.dtype)


def _flash_attention(q, k, v, *, h, d_k, q_tile, kv_tile, vmem_limit):
    B, Sq, D = q.shape
    Skv = k.shape[1]
    dt = q.dtype

    tq = _pick_tile(Sq, q_tile, 8)
    # Keep the parallel grid extent >= 2 so both v7x TensorCores get work.
    if B * (Sq // tq) < 2:
        half = _pick_tile(Sq, max(tq // 2, 8), 8)
        if Sq % half == 0 and Sq // half >= 2:
            tq = half
    tk = _pick_tile(Skv, kv_tile, 8)
    assert Sq % tq == 0 and Skv % tk == 0
    grid = (B, Sq // tq, Skv // tk)

    q_spec = pl.BlockSpec((1, tq, D), lambda b, qi, ki: (b, qi, 0))
    kv_map = lambda b, qi, ki: (b, ki, 0)
    if Skv // tk >= 3:
        # With the projection GEMMs hoisted, per-step compute shrinks and the
        # 2*tk*D kv DMA can become exposed: deepen its pipeline.
        try:
            kv_spec = pl.BlockSpec((1, tk, D), kv_map,
                                   pipeline_mode=pl.Buffered(3))
        except TypeError:                 # older BlockSpec signature
            kv_spec = pl.BlockSpec((1, tk, D), kv_map)
    else:
        kv_spec = pl.BlockSpec((1, tk, D), kv_map)

    approx_recip = bool(jnp.dtype(dt) != jnp.dtype(jnp.float32))
    kernel = functools.partial(_flash_attn_kernel, h=h, d_k=d_k,
                               approx_recip=approx_recip)

    itemsize = jnp.dtype(dt).itemsize
    n_qtiles = Sq // tq
    cost = pl.CostEstimate(
        flops=int(4 * B * Sq * Skv * D),
        transcendentals=int(B * h * Sq * Skv),
        bytes_accessed=int((2 * B * Sq * D                      # q read + out
                            + 2 * B * Skv * D * n_qtiles)       # k,v per q tile
                           * itemsize),
    )

    return pl.pallas_call(
        kernel,
        out_shape=jax.ShapeDtypeStruct((B, Sq, D), dt),
        grid_spec=pltpu.PrefetchScalarGridSpec(
            num_scalar_prefetch=0,
            grid=grid,
            in_specs=[q_spec, kv_spec, kv_spec],
            out_specs=q_spec,
            scratch_shapes=[pltpu.VMEM((tq, D), jnp.float32),      # ctx acc
                            pltpu.VMEM((h, tq, 1), jnp.float32),   # running max
                            pltpu.VMEM((h, tq, 1), jnp.float32)],  # running sum
        ),
        compiler_params=pltpu.CompilerParams(
            dimension_semantics=("parallel", "parallel", "arbitrary"),
            vmem_limit_bytes=vmem_limit),
        cost_estimate=cost,
    )(q, k, v)


# ---------------------------------------------------------------------------
# Full module forward.
# ---------------------------------------------------------------------------

def multi_head_attention(query, key, value, params, *, h,
                         q_tile=512, kv_tile=512,
                         proj_row_tile=512, proj_col_tile=1024):
    """query: (B, Sq, D); key/value: (B, Skv, D).
    params: PyTorch-Linear-style weights (out, in) and biases (out,)."""
    B, Sq, D = query.shape
    Skv = key.shape[1]
    assert value.shape == key.shape
    assert D % h == 0
    d_k = D // h
    dt = query.dtype

    scale = 1.0 / math.sqrt(d_k)
    # Pre-transpose to (in, out) so the MXU consumes weights directly (no
    # in-kernel .T), keep them in the activation dtype, and fold the
    # 1/sqrt(d_k) score scale into the Q projection.  Biases stay fp32.
    wq_t = (params['wq'].T * scale).astype(dt)
    wk_t = params['wk'].T.astype(dt)
    wv_t = params['wv'].T.astype(dt)
    wo_t = params['wo'].T.astype(dt)
    bq = (params['bq'].astype(jnp.float32) * scale).reshape(1, D)
    bk = params['bk'].astype(jnp.float32).reshape(1, D)
    bv = params['bv'].astype(jnp.float32).reshape(1, D)
    bo = params['bo'].astype(jnp.float32).reshape(1, D)

    vmem_limit = _vmem_limit_bytes()
    lin = functools.partial(_linear, out_dtype=dt, row_tile=proj_row_tile,
                            col_tile=proj_col_tile, vmem_limit=vmem_limit)

    # Hoisted projections: each D x D GEMM runs exactly once per tensor
    # (previously the K/V projections were recomputed for every q tile).
    q_p = lin(query.reshape(B * Sq, D), wq_t, bq).reshape(B, Sq, D)
    k_p = lin(key.reshape(B * Skv, D), wk_t, bk).reshape(B, Skv, D)
    v_p = lin(value.reshape(B * Skv, D), wv_t, bv).reshape(B, Skv, D)

    # Fused flash attention on the pre-projected tensors.
    ctx = _flash_attention(q_p, k_p, v_p, h=h, d_k=d_k,
                           q_tile=q_tile, kv_tile=kv_tile,
                           vmem_limit=vmem_limit)

    # Hoisted output projection (wo/bo no longer resident during attention).
    return lin(ctx.reshape(B * Sq, D), wo_t, bo).reshape(B, Sq, D)


# ---------------------------------------------------------------------------
# Pure-JAX reference and test harness.
# ---------------------------------------------------------------------------

def _reference_mha(query, key, value, params, *, h):
    """Pure-JAX reference mirroring the PyTorch forward (dropout = identity)."""
    B, S, D = query.shape
    d_k = D // h

    def lin(x, w, b):
        return x @ w.T + b

    q = lin(query, params['wq'], params['bq']).reshape(B, S, h, d_k).transpose(0, 2, 1, 3)
    k = lin(key,   params['wk'], params['bk']).reshape(B, -1, h, d_k).transpose(0, 2, 1, 3)
    v = lin(value, params['wv'], params['bv']).reshape(B, -1, h, d_k).transpose(0, 2, 1, 3)

    scores = jnp.einsum('bhqd,bhkd->bhqk', q, k) / math.sqrt(d_k)
    p = jax.nn.softmax(scores, axis=-1)
    x = jnp.einsum('bhqk,bhkd->bhqd', p, v)
    x = x.transpose(0, 2, 1, 3).reshape(B, S, D)
    return lin(x, params['wo'], params['bo'])


def _init_params(key, d_model):
    """Deterministic PyTorch-Linear-style init: U(-1/sqrt(fan_in), 1/sqrt(fan_in))."""
    bound = 1.0 / math.sqrt(d_model)
    names = ['wq', 'bq', 'wk', 'bk', 'wv', 'bv', 'wo', 'bo']
    keys = jax.random.split(key, len(names))
    params = {}
    for name, kk in zip(names, keys):
        shape = (d_model, d_model) if name.startswith('w') else (d_model,)
        params[name] = jax.random.uniform(kk, shape, jnp.float32, -bound, bound)
    return params


if __name__ == "__main__":
    # 1) Tiny config matching the module demo: batch=2, seq=8, d_model=32, heads=4.
    B, S, D, H = 2, 8, 32, 4
    k_param, k_q, k_k, k_v = jax.random.split(jax.random.PRNGKey(0), 4)
    params = _init_params(k_param, D)
    q = jax.random.normal(k_q, (B, S, D), jnp.float32)
    k = jax.random.normal(k_k, (B, S, D), jnp.float32)
    v = jax.random.normal(k_v, (B, S, D), jnp.float32)

    out = jax.block_until_ready(multi_head_attention(q, k, v, params, h=H))
    ref = _reference_mha(q, k, v, params, h=H)
    assert out.shape == (B, S, D)
    assert jnp.allclose(out, ref, atol=5e-3, rtol=5e-3), "mismatch (fp32, tiny)"

    # 2) Multi-tile config exercising q tiles and the online-softmax kv axis.
    B2, S2, D2, H2 = 2, 256, 128, 4
    k_param2, k_q2, k_k2, k_v2 = jax.random.split(jax.random.PRNGKey(1), 4)
    params2 = _init_params(k_param2, D2)
    q2 = jax.random.normal(k_q2, (B2, S2, D2), jnp.float32)
    k2 = jax.random.normal(k_k2, (B2, S2, D2), jnp.float32)
    v2 = jax.random.normal(k_v2, (B2, S2, D2), jnp.float32)

    out2 = jax.block_until_ready(
        multi_head_attention(q2, k2, v2, params2, h=H2, q_tile=128, kv_tile=128))
    ref2 = _reference_mha(q2, k2, v2, params2, h=H2)
    assert jnp.allclose(out2, ref2, atol=1e-2, rtol=1e-2), "mismatch (fp32, tiled)"

    # 3) bf16 activations/weights (bf16 MXU inputs, fp32 accumulation + fp32 softmax).
    qb, kb, vb = (a.astype(jnp.bfloat16) for a in (q2, k2, v2))
    params_b = {n: a.astype(jnp.bfloat16) for n, a in params2.items()}
    out3 = jax.block_until_ready(
        multi_head_attention(qb, kb, vb, params_b, h=H2, q_tile=128, kv_tile=128))
    ref3 = _reference_mha(qb.astype(jnp.float32), kb.astype(jnp.float32),
                          vb.astype(jnp.float32),
                          {n: a.astype(jnp.float32) for n, a in params_b.items()},
                          h=H2)
    assert jnp.allclose(out3.astype(jnp.float32), ref3, atol=5e-2, rtol=5e-2), \
        "mismatch (bf16, tiled)"

    print("KERNEL_OK")
</pallas_src>

<mosaic_0001>
module attributes {stable_mosaic.version = 11 : i64} {
  func.func @_linear_kernel(%arg0: i32, %arg1: i32, %arg2: memref<16x32xf32, #tpu.memory_space<vmem>>, %arg3: memref<32x32xf32, #tpu.memory_space<vmem>>, %arg4: memref<1x32xf32, #tpu.memory_space<vmem>>, %arg5: memref<16x32xf32, #tpu.memory_space<vmem>>) attributes {dimension_semantics = [#tpu.dimension_semantics<parallel>, #tpu.dimension_semantics<parallel>], iteration_bounds = array<i64: 1, 1>, scalar_prefetch = 0 : i64, scratch_operands = 0 : i64, tpu.core_type = #tpu.core_type<tc>, window_params = [{transform_indices = @transform_0, window_bounds = array<i64: 16, 32>}, {transform_indices = @transform_1, window_bounds = array<i64: 32, 32>}, {transform_indices = @transform_2, window_bounds = array<i64: 1, 32>}, {transform_indices = @transform_3, window_bounds = array<i64: 16, 32>}]} {
    %c0 = arith.constant 0 : index
    %c0_0 = arith.constant 0 : index
    %0 = vector.load %arg2[%c0, %c0_0] : memref<16x32xf32, #tpu.memory_space<vmem>>, vector<16x32xf32>
    %c0_1 = arith.constant 0 : index
    %c0_2 = arith.constant 0 : index
    %1 = vector.load %arg3[%c0_1, %c0_2] : memref<32x32xf32, #tpu.memory_space<vmem>>, vector<32x32xf32>
    %cst = arith.constant dense<0.000000e+00> : vector<16x32xf32>
    %2 = tpu.matmul %0, %1, %cst {dimension_numbers = #tpu.dot_dimension_numbers<[1], [0], [0], [1], [0, 0, 1, 1], [], []>} : vector<16x32xf32>, vector<32x32xf32>, vector<16x32xf32> -> vector<16x32xf32>
    %c0_3 = arith.constant 0 : index
    %c0_4 = arith.constant 0 : index
    %3 = vector.load %arg4[%c0_3, %c0_4] : memref<1x32xf32, #tpu.memory_space<vmem>>, vector<1x32xf32>
    %4 = vector.broadcast %3 : vector<1x32xf32> to vector<16x32xf32>
    %5 = arith.addf %2, %4 : vector<16x32xf32>
    %c0_5 = arith.constant 0 : index
    %c0_6 = arith.constant 0 : index
    %6 = vector.load %arg5[%c0_5, %c0_6] : memref<16x32xf32, #tpu.memory_space<vmem>>, vector<16x32xf32>
    tpu.vector_store %arg5[%c0_5, %c0_6], %5 {strides = array<i32>} : memref<16x32xf32, #tpu.memory_space<vmem>>, vector<16x32xf32>,
    return
  }
  func.func @transform_0(%arg0: i32, %arg1: i32) -> (i32, i32) {
    %c0_i32 = arith.constant 0 : i32
    %c0_i32_0 = arith.constant 0 : i32
    return %arg0, %c0_i32 : i32, i32
  }
  func.func @transform_1(%arg0: i32, %arg1: i32) -> (i32, i32) {
    %c0_i32 = arith.constant 0 : i32
    %c0_i32_0 = arith.constant 0 : i32
    return %c0_i32, %arg1 : i32, i32
  }
  func.func @transform_2(%arg0: i32, %arg1: i32) -> (i32, i32) {
    %c0_i32 = arith.constant 0 : i32
    %c0_i32_0 = arith.constant 0 : i32
    return %c0_i32, %arg1 : i32, i32
  }
  func.func @transform_3(%arg0: i32, %arg1: i32) -> (i32, i32) {
    %c0_i32 = arith.constant 0 : i32
    return %arg0, %arg1 : i32, i32
  }
}

</mosaic_0001>

<bundles_post_ra>
// kernel: tpu_custom_call.1
= control target key start
LH: loop header
LB: loop body
LE: loop exit
PB: predicated region body
PF: predicated region fallthrough
CT: control target
= control target key end

     0   :  { %8 = vsyncpa [#allocation3], 0  ;;  %s299_s0 = inlined_call_operand.hbm [shape: f32[16,32], index: 0, kind: input, shape index: {}]   ;;  %s300_s1 = inlined_call_operand.hbm [shape: f32[32,32], index: 1, kind: input, shape index: {}]   ;;  %s301_s2 = inlined_call_operand.vmem [shape: f32[1,32], index: 2, kind: input, shape index: {}]   ;;  %s302_s3 = inlined_call_operand.hbm [shape: f32[16,32], index: 3, kind: output, shape index: {}]  }
   0x1   :  { %9 = vsyncpa [#allocation6], 0 }
   0x2   :  { %10 = vsyncpa [#allocation4], 0  ;;  %s249_s12 = smov [#allocation2]  }
   0x3   :  { %s16_s13 = sshll.u32 %s249_s12, 4  ;;  %s17_s13 = int_to_ptr.vmem [resolvable:$true] %s16_s13 }
   0x4   :  { %s191_s14 = scalar_lea.vmem %s17_s13, 256  ;;  %p196_p1 = scmp.lt.s32.totalorder %s17_s13, %s17_s13 }
   0x5   :  { %p192_p0 = scmp.ne.s32.totalorder %s17_s13, %s191_s14  ;;  %p197_p2 = scmp.lt.s32.totalorder %s191_s14, %s191_s14 }
   0x7   :  { %p198_p3 = por %p197_p2, %p196_p1 }
   0x9   :  { %p199_p4 = pnand %p198_p3, %p192_p0 }
   0xb   :  { %202 = shalt.err (!%p199_p4)
}
   0xc   :  { %s250_s15 = smov 128   ;;  %s251_s16 = smov 8  }
   0xd   :  { %22 = dma.hbm_to_vmem [thread:$0]  %s299_s0, 256, %s17_s13, [#allocation3], %s250_s15, %s250_s15, %s251_s16  }
   0xe   :  { %s252_s19 = smov [#allocation5]  }
   0xf   :  { %s28_s20 = sshll.u32 %s252_s19, 4  ;;  %s29_s20 = int_to_ptr.vmem [resolvable:$true] %s28_s20 }
  0x10   :  { %s211_s21 = scalar_lea.vmem %s29_s20, 512  ;;  %p216_p6 = scmp.lt.s32.totalorder %s29_s20, %s29_s20 }
  0x11   :  { %p212_p5 = scmp.ne.s32.totalorder %s29_s20, %s211_s21  ;;  %p217_p7 = scmp.lt.s32.totalorder %s211_s21, %s211_s21 }
  0x13   :  { %p218_p8 = por %p217_p7, %p216_p6 }
  0x15   :  { %p219_p9 = pnand %p218_p8, %p212_p5 }
  0x17   :  { %222 = shalt.err (!%p219_p9)
}
  0x18   :  { %34 = dma.hbm_to_vmem [thread:$0]  %s300_s1, 512, %s29_s20, [#allocation6], %s250_s15, %s250_s15, %s251_s16  }
  0x19   :  { %243 = dma.done.wait [#allocation3], 256  }
  0x1a   :  { %244 = vsyncadd [#allocation3], 4294967040 }
  0x1b   :  { %245 = dma.done.wait [#allocation6], 512  }
  0x1c   :  { %246 = vsyncadd [#allocation6], 4294966784  ;;  %vm56_vm0 = vcmask 261120   ;;  %v48_v0 = vld [vmem:[#allocation5 + $0x18] sm:$0xff]  ;;  %v47_v1 = vld [vmem:[#allocation5 + $0x10] sm:$0xff]  ;;  %s253_s24 = smov [#allocation7]  }
  0x1d   :  { %167 = vmatprep.subr.mxu0 %v48_v0  ;;  %v43_v2 = vld [vmem:[#allocation2] sm:$0xff]  ;;  %v46_v3 = vld [vmem:[#allocation5 + $0x8] sm:$0xff]  ;;  %v45_v4 = vld [vmem:[#allocation5] sm:$0xff]  ;;  %s145_s25 = sshll.u32 %s253_s24, 4  ;;  %s146_s25 = int_to_ptr.vmem [resolvable:$true] %s145_s25 }
  0x1e   :  { %168 = vmatpush3.msra.mxu0 %v48_v0  ;;  %175 = vmatprep.mubr.msk.f32.mxu0 %vm56_vm0, %v43_v2  ;;  %v44_v5 = vld [vmem:[#allocation2 + $0x8] sm:$0xff]  ;;  %v158_v6 = vld [vmem:[%s301_s2] ss:$0 sm:$0xff]  ;;  %s223_s26 = scalar_lea.vmem %s146_s25, 256  ;;  %p228_p11 = scmp.lt.s32.totalorder %s146_s25, %s146_s25 }
  0x1f   :  { %169 = vmatprep.subr.mxu0 %v47_v1  ;;  %p224_p10 = scmp.ne.s32.totalorder %s146_s25, %s223_s26  ;;  %p229_p12 = scmp.lt.s32.totalorder %s223_s26, %s223_s26 }
  0x20   :  { %170 = vmatpush3.msra.mxu0 %v47_v1 }
  0x21   :  { %171 = vmatprep.subr.mxu0 %v46_v3  ;;  %p230_p13 = por %p229_p12, %p228_p11 }
  0x22   :  { %172 = vmatpush3.msra.mxu0 %v46_v3 }
  0x23   :  { %173 = vmatprep.subr.mxu0 %v45_v4  ;;  %p231_p0 = pnand %p230_p13, %p224_p10 }
  0x24   :  { %174 = vmatpush3.msra.mxu0 %v45_v4 }
  0x25   :  { %176 = vmatmul.mubr.msk.f32.vlgmr.msra.gmra.mxu0 %vm56_vm0, %v44_v5 }
  0xe5   :  { %v177_v7 = vpop.f32.mrf.mxu0 }
  0xe6   :  { %v135_v8 = vadd.f32 %v177_v7, %v158_v6 }
  0xe7   :  { %v129_v9 = vpop.f32.mrf.mxu0 }
  0xe8   :  { %139 = vst.msk [vmem:[#allocation7 + $0x8] sm:$0xff] %vm56_vm0, %v135_v8  ;;  %v130_v10 = vadd.f32 %v158_v6, %v129_v9 }
  0xea   :  { %138 = vst.msk [vmem:[#allocation7] sm:$0xff] %vm56_vm0, %v130_v10 }
  0xeb   :  { %234 = shalt.err (!%p231_p0)
}
  0xec   :  { %151 = dma.vmem_to_hbm [thread:$0]  %s146_s25, 256, %s302_s3, [#allocation4], %s250_s15, %s250_s15, %s251_s16  }
  0xed   :  { %247 = dma.done.wait [#allocation4], 256  }
  0xee   :  { %248 = vsyncadd [#allocation4], 4294967040 }
  0xef   :  { %155 = vsyncpa [#allocation3], 1 }
  0xf0   :  { %156 = vsyncpa [#allocation6], 1 }
  0xf1   :  { %157 = vsyncpa [#allocation4], 1 }

</bundles_post_ra>
